<compile_context>
chip_gen: v7x
topology: tpu7x:2x2x1
jax: 0.10.0
libtpu: 0.0.40
codegen_flags: <defaults>
</compile_context>

<pallas_src>
import functools

import jax
import jax.numpy as jnp
from jax import lax
from jax.experimental import pallas as pl
from jax.experimental.pallas import tpu as pltpu


def _round_up(a, b):
    return ((a + b - 1) // b) * b


def _pairwise_accum_kernel(layer_ref, acc_ref, *, metric, l1_chunk):
    """Grid (num_splits, blocks_per_split): per-split (N, N) partial sums.

    acc_ref is the resident (1, N, N) f32 output block of the current split:
      'l2' / 'cosine':  G[i, j] += sum_d x_i[d] * x_j[d]        (gram)
      'l1'           :  S[i, j] += sum_d |x_j[d] - x_i[d]|
    """
    k = pl.program_id(1)

    @pl.when(k == 0)
    def _init():
        acc_ref[...] = jnp.zeros_like(acc_ref)

    x = layer_ref[...]                       # (N, TD) in input dtype (f32/bf16)
    n, td = x.shape

    if metric in ('l2', 'cosine'):
        # Contract on the last dims of both operands: MXU consumes the tile
        # without an XLU transpose; f32 accumulation.  N=8 is intentionally
        # NOT padded toward the MXU size -- the kernel is DMA/overhead bound.
        gram = lax.dot_general(
            x, x,
            dimension_numbers=(((1,), (1,)), ((), ())),
            preferred_element_type=jnp.float32)               # (N, N)
        acc_ref[...] += gram.reshape(acc_ref.shape)
    elif metric == 'l1':
        col_iota = lax.broadcasted_iota(jnp.int32, (n, n), 1)
        block = jnp.zeros((n, n), jnp.float32)
        # Chunk the lane dim so only one (N, chunk) diff is live at a time
        # (bounded vreg pressure regardless of tile width).  Sub/abs stay in
        # the input dtype (bf16 VALU on v6e/v7x, legalized to f32 on v5e);
        # only the (N, 1) row sums accumulate in f32.
        for start in range(0, td, l1_chunk):
            stop = min(start + l1_chunk, td)
            xc = x[:, start:stop]                             # static slice
            for i in range(n):                                # N small & static
                diff = jnp.abs(xc - xc[i:i + 1, :])           # (N, chunk)
                col = jnp.sum(diff.astype(jnp.float32), axis=1, keepdims=True)
                block = block + jnp.where(col_iota == i, col, 0.0)
        acc_ref[...] += block.reshape(acc_ref.shape)
    else:
        raise ValueError(metric)


def _finalize_kernel(part_ref, noise_ref, out_ref, *, metric, d_true, noise_d):
    """Tiny single-step micro-pass: combine partials -> layer_dist, noise_dist,
    exp(mean(-noise_dist * layer_dist))."""
    acc = part_ref[0]                                         # (N, N) f32
    for s in range(1, part_ref.shape[0]):                     # <= 2 partials
        acc = acc + part_ref[s]
    n = acc.shape[0]

    rows_i = lax.broadcasted_iota(jnp.int32, (n, n), 0)
    cols_i = lax.broadcasted_iota(jnp.int32, (n, n), 1)

    if metric in ('l2', 'cosine'):
        masked = jnp.where(rows_i == cols_i, acc, 0.0)
        diag_col = jnp.sum(masked, axis=1, keepdims=True)     # (N, 1) = acc[i, i]
        diag_row = jnp.sum(masked, axis=0, keepdims=True)     # (1, N) = acc[j, j]
        if metric == 'l2':
            # mean_d (x_j - x_i)^2 = (|xi|^2 + |xj|^2 - 2 xi.xj) / D ;
            # clamp >= 0 against cancellation for near-identical rows.
            layer_dist = jnp.maximum(diag_col + diag_row - 2.0 * acc, 0.0)
            layer_dist = layer_dist * (1.0 / float(d_true))
        else:
            # torch CosineSimilarity: 1 - xi.xj / max(||xi|| * ||xj||, 1e-8)
            norm_col = jnp.sqrt(jnp.maximum(diag_col, 0.0))
            norm_row = jnp.sqrt(jnp.maximum(diag_row, 0.0))
            denom = jnp.maximum(norm_col * norm_row, jnp.float32(1e-8))
            layer_dist = 1.0 - acc / denom
    else:  # 'l1'
        layer_dist = acc * (1.0 / float(d_true))

    # noises is tiny (N, noise_d): direct VPU pairwise L2, no MXU round-trip.
    nz = noise_ref[...].astype(jnp.float32)
    noise_block = jnp.zeros((n, n), jnp.float32)
    for i in range(n):
        nd = nz - nz[i:i + 1, :]
        ncol = jnp.sum(nd * nd, axis=1, keepdims=True)        # (N, 1)
        noise_block = noise_block + jnp.where(cols_i == i, ncol, 0.0)
    noise_dist = noise_block * (1.0 / float(noise_d))

    result = jnp.exp(jnp.mean(-noise_dist * layer_dist))
    out_ref[...] = jnp.reshape(result, (1, 1))


def diversity_loss(noises, layer, metric, *, block_d=32768, block_d_l1=4096):
    """noises: (N, noise_d); layer: (N, ...) flattened to (N, D). Returns f32 scalar."""
    if metric not in ('l1', 'l2', 'cosine'):
        raise ValueError(metric)
    if layer.ndim > 2:
        layer = layer.reshape(layer.shape[0], -1)
    n, d = layer.shape
    n2, noise_d = noises.shape
    assert n == n2, (n, n2)

    # Feature tile: large for l2/cosine (each grid step moves ~1-2 MiB so the
    # ~0.35us/step overhead is amortized; double-buffered it is still only a
    # few MiB, fine on v5e/v6e/v7x).  Moderate for l1 (VPU-bound; lane-chunked
    # inside the kernel).
    target = block_d_l1 if metric == 'l1' else block_d
    target = min(max(int(target), 128), 65536)
    td = min(_round_up(d, 128), _round_up(target, 128))

    num_blocks = pl.cdiv(d, td)
    # Shard the D reduction across (up to) 2 TensorCores via a leading
    # "parallel" axis (v7x megacore).  On single-TC chips (v5e/v6e) it just
    # serializes and only costs one extra tiny (N, N) partial.
    num_splits = 2 if num_blocks >= 2 else 1
    num_blocks = _round_up(num_blocks, num_splits)
    blocks_per_split = num_blocks // num_splits

    d_pad = num_blocks * td
    if d_pad != d:
        # Zero padding leaves the l1 / gram partial sums unchanged; the
        # finalize pass normalizes by the true D.
        layer = jnp.pad(layer, ((0, 0), (0, d_pad - d)))

    acc_kernel = functools.partial(_pairwise_accum_kernel, metric=metric,
                                   l1_chunk=512)
    partials = pl.pallas_call(
        acc_kernel,
        out_shape=jax.ShapeDtypeStruct((num_splits, n, n), jnp.float32),
        grid_spec=pltpu.PrefetchScalarGridSpec(
            num_scalar_prefetch=0,
            grid=(num_splits, blocks_per_split),
            in_specs=[
                pl.BlockSpec((n, td),
                             lambda c, k: (0, c * blocks_per_split + k)),
            ],
            out_specs=pl.BlockSpec((1, n, n), lambda c, k: (c, 0, 0)),
        ),
        compiler_params=pltpu.CompilerParams(
            dimension_semantics=("parallel", "arbitrary")),
    )(layer)

    fin_kernel = functools.partial(_finalize_kernel, metric=metric,
                                   d_true=d, noise_d=noise_d)
    out = pl.pallas_call(
        fin_kernel,
        out_shape=jax.ShapeDtypeStruct((1, 1), jnp.float32),
        grid_spec=pltpu.PrefetchScalarGridSpec(
            num_scalar_prefetch=0,
            grid=(1,),
            in_specs=[pl.BlockSpec((num_splits, n, n), lambda i: (0, 0, 0)),
                      pl.BlockSpec((n, noise_d), lambda i: (0, 0))],
            out_specs=pl.BlockSpec((1, 1), lambda i: (0, 0)),
        ),
        compiler_params=pltpu.CompilerParams(
            dimension_semantics=("arbitrary",)),
    )(partials, noises)
    return out[0, 0]


def _reference_diversity_loss(noises, layer, metric):
    """Pure-JAX reference mirroring the PyTorch module, for validation."""
    if layer.ndim > 2:
        layer = layer.reshape(layer.shape[0], -1)

    def pairwise(x, how):
        t1 = x[None, :, :].astype(jnp.float32)
        t2 = x[:, None, :].astype(jnp.float32)
        if how == 'l1':
            return jnp.mean(jnp.abs(t1 - t2), axis=2)
        if how == 'l2':
            return jnp.mean((t1 - t2) ** 2, axis=2)
        if how == 'cosine':
            num = jnp.sum(t1 * t2, axis=2)
            denom = jnp.maximum(
                jnp.linalg.norm(t1, axis=2) * jnp.linalg.norm(t2, axis=2), 1e-8)
            return 1.0 - num / denom
        raise ValueError(how)

    layer_dist = pairwise(layer, metric)
    noise_dist = pairwise(noises, 'l2')
    return jnp.exp(jnp.mean(-noise_dist * layer_dist))


if __name__ == "__main__":
    key = jax.random.PRNGKey(0)
    k_noise, k_layer, k_small = jax.random.split(key, 3)

    N, NOISE_DIM = 8, 32
    C, H, W = 4, 16, 16

    noises = jax.random.normal(k_noise, (N, NOISE_DIM), dtype=jnp.float32)
    # NCHW conv-style activation; flattened to (N, C*H*W) inside the wrapper.
    layer = jax.random.normal(k_layer, (N, C, H, W), dtype=jnp.float32)

    for metric in ('l1', 'l2', 'cosine'):
        out = jax.block_until_ready(diversity_loss(noises, layer, metric))
        ref = jax.block_until_ready(_reference_diversity_loss(noises, layer, metric))
        assert jnp.allclose(out, ref, rtol=2e-3, atol=1e-5), (metric, out, ref)

    # Small feature tiles force the multi-block + 2-way-split reduction path.
    for metric in ('l1', 'l2', 'cosine'):
        out = jax.block_until_ready(
            diversity_loss(noises, layer, metric, block_d=256, block_d_l1=256))
        ref = jax.block_until_ready(_reference_diversity_loss(noises, layer, metric))
        assert jnp.allclose(out, ref, rtol=2e-3, atol=1e-5), (metric, out, ref)

    # Feature dim not a multiple of 128 exercises the zero-padding path.
    layer_small = jax.random.normal(k_small, (N, 200), dtype=jnp.float32)
    for metric in ('l1', 'l2', 'cosine'):
        out = jax.block_until_ready(diversity_loss(noises, layer_small, metric))
        ref = jax.block_until_ready(
            _reference_diversity_loss(noises, layer_small, metric))
        assert jnp.allclose(out, ref, rtol=2e-3, atol=1e-5), (metric, out, ref)

    # bf16 producer path: wrapper never casts; sub/abs run in bf16 on the VALU
    # (v6e/v7x), gram uses bf16 MXU operands with f32 accumulation.
    layer_bf16 = layer.astype(jnp.bfloat16)
    for metric in ('l1', 'l2', 'cosine'):
        out = jax.block_until_ready(diversity_loss(noises, layer_bf16, metric))
        ref = jax.block_until_ready(
            _reference_diversity_loss(noises, layer_bf16, metric))
        assert jnp.allclose(out, ref, rtol=2e-2, atol=1e-3), (metric, out, ref)

    print("KERNEL_OK")
</pallas_src>

<mosaic_0001>
module attributes {stable_mosaic.version = 11 : i64} {
  func.func @_pairwise_accum_kernel(%arg0: i32, %arg1: i32, %arg2: memref<8x1024xf32, #tpu.memory_space<vmem>>, %arg3: memref<1x8x8xf32, #tpu.memory_space<vmem>>) attributes {dimension_semantics = [#tpu.dimension_semantics<parallel>, #tpu.dimension_semantics<arbitrary>], iteration_bounds = array<i64: 1, 1>, scalar_prefetch = 0 : i64, scratch_operands = 0 : i64, tpu.core_type = #tpu.core_type<tc>, window_params = [{transform_indices = @transform_0, window_bounds = array<i64: 8, 1024>}, {transform_indices = @transform_1, window_bounds = array<i64: 1, 8, 8>}]} {
    %c0_i32 = arith.constant 0 : i32
    %0 = arith.cmpi eq, %arg1, %c0_i32 : i32
    %1 = arith.extui %0 : i1 to i32
    %c0_i32_0 = arith.constant 0 : i32
    %2 = arith.cmpi ne, %1, %c0_i32_0 : i32
    scf.if %2 {
      %cst_49 = arith.constant 0.000000e+00 : f32
      %220 = vector.broadcast %cst_49 : f32 to vector<1x8x8xf32>
      %c0_50 = arith.constant 0 : index
      %c0_51 = arith.constant 0 : index
      %c0_52 = arith.constant 0 : index
      %221 = vector.load %arg3[%c0_50, %c0_51, %c0_52] : memref<1x8x8xf32, #tpu.memory_space<vmem>>, vector<1x8x8xf32>
      tpu.vector_store %arg3[%c0_50, %c0_51, %c0_52], %220 {strides = array<i32>} : memref<1x8x8xf32, #tpu.memory_space<vmem>>, vector<1x8x8xf32>,
    } else {
    }
    %c0 = arith.constant 0 : index
    %c0_1 = arith.constant 0 : index
    %3 = vector.load %arg2[%c0, %c0_1] : memref<8x1024xf32, #tpu.memory_space<vmem>>, vector<8x1024xf32>
    %4 = tpu.iota {dimensions = array<i32: 1>} : vector<8x8xi32>
    %cst = arith.constant 0.000000e+00 : f32
    %5 = vector.broadcast %cst : f32 to vector<8x8xf32>
    %6 = vector.extract_strided_slice %3 {offsets = [0, 0], sizes = [8, 512], strides = [1, 1]} : vector<8x1024xf32> to vector<8x512xf32>
    %7 = vector.extract_strided_slice %6 {offsets = [0, 0], sizes = [1, 512], strides = [1, 1]} : vector<8x512xf32> to vector<1x512xf32>
    %8 = vector.broadcast %7 : vector<1x512xf32> to vector<8x512xf32>
    %9 = arith.subf %6, %8 : vector<8x512xf32>
    %10 = math.absf %9 : vector<8x512xf32>
    %cst_2 = arith.constant dense<0.000000e+00> : vector<8xf32>
    %11 = vector.multi_reduction <add>, %10, %cst_2 [1] : vector<8x512xf32> to vector<8xf32>
    %12 = vector.shape_cast %11 : vector<8xf32> to vector<8x1xf32>
    %c0_i32_3 = arith.constant 0 : i32
    %13 = vector.broadcast %c0_i32_3 : i32 to vector<8x8xi32>
    %14 = arith.cmpi eq, %4, %13 : vector<8x8xi32>
    %cst_4 = arith.constant 0.000000e+00 : f32
    %15 = vector.shape_cast %12 : vector<8x1xf32> to vector<8x1xf32>
    %16 = vector.broadcast %15 : vector<8x1xf32> to vector<8x8xf32>
    %17 = vector.broadcast %cst_4 : f32 to vector<8x8xf32>
    %18 = arith.select %14, %16, %17 : vector<8x8xi1>, vector<8x8xf32>
    %19 = arith.addf %5, %18 : vector<8x8xf32>
    %20 = vector.extract_strided_slice %6 {offsets = [1, 0], sizes = [1, 512], strides = [1, 1]} : vector<8x512xf32> to vector<1x512xf32>
    %21 = vector.broadcast %20 : vector<1x512xf32> to vector<8x512xf32>
    %22 = arith.subf %6, %21 : vector<8x512xf32>
    %23 = math.absf %22 : vector<8x512xf32>
    %cst_5 = arith.constant dense<0.000000e+00> : vector<8xf32>
    %24 = vector.multi_reduction <add>, %23, %cst_5 [1] : vector<8x512xf32> to vector<8xf32>
    %25 = vector.shape_cast %24 : vector<8xf32> to vector<8x1xf32>
    %c1_i32 = arith.constant 1 : i32
    %26 = vector.broadcast %c1_i32 : i32 to vector<8x8xi32>
    %27 = arith.cmpi eq, %4, %26 : vector<8x8xi32>
    %cst_6 = arith.constant 0.000000e+00 : f32
    %28 = vector.shape_cast %25 : vector<8x1xf32> to vector<8x1xf32>
    %29 = vector.broadcast %28 : vector<8x1xf32> to vector<8x8xf32>
    %30 = vector.broadcast %cst_6 : f32 to vector<8x8xf32>
    %31 = arith.select %27, %29, %30 : vector<8x8xi1>, vector<8x8xf32>
    %32 = arith.addf %19, %31 : vector<8x8xf32>
    %33 = vector.extract_strided_slice %6 {offsets = [2, 0], sizes = [1, 512], strides = [1, 1]} : vector<8x512xf32> to vector<1x512xf32>
    %34 = vector.broadcast %33 : vector<1x512xf32> to vector<8x512xf32>
    %35 = arith.subf %6, %34 : vector<8x512xf32>
    %36 = math.absf %35 : vector<8x512xf32>
    %cst_7 = arith.constant dense<0.000000e+00> : vector<8xf32>
    %37 = vector.multi_reduction <add>, %36, %cst_7 [1] : vector<8x512xf32> to vector<8xf32>
    %38 = vector.shape_cast %37 : vector<8xf32> to vector<8x1xf32>
    %c2_i32 = arith.constant 2 : i32
    %39 = vector.broadcast %c2_i32 : i32 to vector<8x8xi32>
    %40 = arith.cmpi eq, %4, %39 : vector<8x8xi32>
    %cst_8 = arith.constant 0.000000e+00 : f32
    %41 = vector.shape_cast %38 : vector<8x1xf32> to vector<8x1xf32>
    %42 = vector.broadcast %41 : vector<8x1xf32> to vector<8x8xf32>
    %43 = vector.broadcast %cst_8 : f32 to vector<8x8xf32>
    %44 = arith.select %40, %42, %43 : vector<8x8xi1>, vector<8x8xf32>
    %45 = arith.addf %32, %44 : vector<8x8xf32>
    %46 = vector.extract_strided_slice %6 {offsets = [3, 0], sizes = [1, 512], strides = [1, 1]} : vector<8x512xf32> to vector<1x512xf32>
    %47 = vector.broadcast %46 : vector<1x512xf32> to vector<8x512xf32>
    %48 = arith.subf %6, %47 : vector<8x512xf32>
    %49 = math.absf %48 : vector<8x512xf32>
    %cst_9 = arith.constant dense<0.000000e+00> : vector<8xf32>
    %50 = vector.multi_reduction <add>, %49, %cst_9 [1] : vector<8x512xf32> to vector<8xf32>
    %51 = vector.shape_cast %50 : vector<8xf32> to vector<8x1xf32>
    %c3_i32 = arith.constant 3 : i32
    %52 = vector.broadcast %c3_i32 : i32 to vector<8x8xi32>
    %53 = arith.cmpi eq, %4, %52 : vector<8x8xi32>
    %cst_10 = arith.constant 0.000000e+00 : f32
    %54 = vector.shape_cast %51 : vector<8x1xf32> to vector<8x1xf32>
    %55 = vector.broadcast %54 : vector<8x1xf32> to vector<8x8xf32>
    %56 = vector.broadcast %cst_10 : f32 to vector<8x8xf32>
    %57 = arith.select %53, %55, %56 : vector<8x8xi1>, vector<8x8xf32>
    %58 = arith.addf %45, %57 : vector<8x8xf32>
    %59 = vector.extract_strided_slice %6 {offsets = [4, 0], sizes = [1, 512], strides = [1, 1]} : vector<8x512xf32> to vector<1x512xf32>
    %60 = vector.broadcast %59 : vector<1x512xf32> to vector<8x512xf32>
    %61 = arith.subf %6, %60 : vector<8x512xf32>
    %62 = math.absf %61 : vector<8x512xf32>
    %cst_11 = arith.constant dense<0.000000e+00> : vector<8xf32>
    %63 = vector.multi_reduction <add>, %62, %cst_11 [1] : vector<8x512xf32> to vector<8xf32>
    %64 = vector.shape_cast %63 : vector<8xf32> to vector<8x1xf32>
    %c4_i32 = arith.constant 4 : i32
    %65 = vector.broadcast %c4_i32 : i32 to vector<8x8xi32>
    %66 = arith.cmpi eq, %4, %65 : vector<8x8xi32>
    %cst_12 = arith.constant 0.000000e+00 : f32
    %67 = vector.shape_cast %64 : vector<8x1xf32> to vector<8x1xf32>
    %68 = vector.broadcast %67 : vector<8x1xf32> to vector<8x8xf32>
    %69 = vector.broadcast %cst_12 : f32 to vector<8x8xf32>
    %70 = arith.select %66, %68, %69 : vector<8x8xi1>, vector<8x8xf32>
    %71 = arith.addf %58, %70 : vector<8x8xf32>
    %72 = vector.extract_strided_slice %6 {offsets = [5, 0], sizes = [1, 512], strides = [1, 1]} : vector<8x512xf32> to vector<1x512xf32>
    %73 = vector.broadcast %72 : vector<1x512xf32> to vector<8x512xf32>
    %74 = arith.subf %6, %73 : vector<8x512xf32>
    %75 = math.absf %74 : vector<8x512xf32>
    %cst_13 = arith.constant dense<0.000000e+00> : vector<8xf32>
    %76 = vector.multi_reduction <add>, %75, %cst_13 [1] : vector<8x512xf32> to vector<8xf32>
    %77 = vector.shape_cast %76 : vector<8xf32> to vector<8x1xf32>
    %c5_i32 = arith.constant 5 : i32
    %78 = vector.broadcast %c5_i32 : i32 to vector<8x8xi32>
    %79 = arith.cmpi eq, %4, %78 : vector<8x8xi32>
    %cst_14 = arith.constant 0.000000e+00 : f32
    %80 = vector.shape_cast %77 : vector<8x1xf32> to vector<8x1xf32>
    %81 = vector.broadcast %80 : vector<8x1xf32> to vector<8x8xf32>
    %82 = vector.broadcast %cst_14 : f32 to vector<8x8xf32>
    %83 = arith.select %79, %81, %82 : vector<8x8xi1>, vector<8x8xf32>
    %84 = arith.addf %71, %83 : vector<8x8xf32>
    %85 = vector.extract_strided_slice %6 {offsets = [6, 0], sizes = [1, 512], strides = [1, 1]} : vector<8x512xf32> to vector<1x512xf32>
    %86 = vector.broadcast %85 : vector<1x512xf32> to vector<8x512xf32>
    %87 = arith.subf %6, %86 : vector<8x512xf32>
    %88 = math.absf %87 : vector<8x512xf32>
    %cst_15 = arith.constant dense<0.000000e+00> : vector<8xf32>
    %89 = vector.multi_reduction <add>, %88, %cst_15 [1] : vector<8x512xf32> to vector<8xf32>
    %90 = vector.shape_cast %89 : vector<8xf32> to vector<8x1xf32>
    %c6_i32 = arith.constant 6 : i32
    %91 = vector.broadcast %c6_i32 : i32 to vector<8x8xi32>
    %92 = arith.cmpi eq, %4, %91 : vector<8x8xi32>
    %cst_16 = arith.constant 0.000000e+00 : f32
    %93 = vector.shape_cast %90 : vector<8x1xf32> to vector<8x1xf32>
    %94 = vector.broadcast %93 : vector<8x1xf32> to vector<8x8xf32>
    %95 = vector.broadcast %cst_16 : f32 to vector<8x8xf32>
    %96 = arith.select %92, %94, %95 : vector<8x8xi1>, vector<8x8xf32>
    %97 = arith.addf %84, %96 : vector<8x8xf32>
    %98 = vector.extract_strided_slice %6 {offsets = [7, 0], sizes = [1, 512], strides = [1, 1]} : vector<8x512xf32> to vector<1x512xf32>
    %99 = vector.broadcast %98 : vector<1x512xf32> to vector<8x512xf32>
    %100 = arith.subf %6, %99 : vector<8x512xf32>
    %101 = math.absf %100 : vector<8x512xf32>
    %cst_17 = arith.constant dense<0.000000e+00> : vector<8xf32>
    %102 = vector.multi_reduction <add>, %101, %cst_17 [1] : vector<8x512xf32> to vector<8xf32>
    %103 = vector.shape_cast %102 : vector<8xf32> to vector<8x1xf32>
    %c7_i32 = arith.constant 7 : i32
    %104 = vector.broadcast %c7_i32 : i32 to vector<8x8xi32>
    %105 = arith.cmpi eq, %4, %104 : vector<8x8xi32>
    %cst_18 = arith.constant 0.000000e+00 : f32
    %106 = vector.shape_cast %103 : vector<8x1xf32> to vector<8x1xf32>
    %107 = vector.broadcast %106 : vector<8x1xf32> to vector<8x8xf32>
    %108 = vector.broadcast %cst_18 : f32 to vector<8x8xf32>
    %109 = arith.select %105, %107, %108 : vector<8x8xi1>, vector<8x8xf32>
    %110 = arith.addf %97, %109 : vector<8x8xf32>
    %111 = vector.extract_strided_slice %3 {offsets = [0, 512], sizes = [8, 512], strides = [1, 1]} : vector<8x1024xf32> to vector<8x512xf32>
    %112 = vector.extract_strided_slice %111 {offsets = [0, 0], sizes = [1, 512], strides = [1, 1]} : vector<8x512xf32> to vector<1x512xf32>
    %113 = vector.broadcast %112 : vector<1x512xf32> to vector<8x512xf32>
    %114 = arith.subf %111, %113 : vector<8x512xf32>
    %115 = math.absf %114 : vector<8x512xf32>
    %cst_19 = arith.constant dense<0.000000e+00> : vector<8xf32>
    %116 = vector.multi_reduction <add>, %115, %cst_19 [1] : vector<8x512xf32> to vector<8xf32>
    %117 = vector.shape_cast %116 : vector<8xf32> to vector<8x1xf32>
    %c0_i32_20 = arith.constant 0 : i32
    %118 = vector.broadcast %c0_i32_20 : i32 to vector<8x8xi32>
    %119 = arith.cmpi eq, %4, %118 : vector<8x8xi32>
    %cst_21 = arith.constant 0.000000e+00 : f32
    %120 = vector.shape_cast %117 : vector<8x1xf32> to vector<8x1xf32>
    %121 = vector.broadcast %120 : vector<8x1xf32> to vector<8x8xf32>
    %122 = vector.broadcast %cst_21 : f32 to vector<8x8xf32>
    %123 = arith.select %119, %121, %122 : vector<8x8xi1>, vector<8x8xf32>
    %124 = arith.addf %110, %123 : vector<8x8xf32>
    %125 = vector.extract_strided_slice %111 {offsets = [1, 0], sizes = [1, 512], strides = [1, 1]} : vector<8x512xf32> to vector<1x512xf32>
    %126 = vector.broadcast %125 : vector<1x512xf32> to vector<8x512xf32>
    %127 = arith.subf %111, %126 : vector<8x512xf32>
    %128 = math.absf %127 : vector<8x512xf32>
    %cst_22 = arith.constant dense<0.000000e+00> : vector<8xf32>
    %129 = vector.multi_reduction <add>, %128, %cst_22 [1] : vector<8x512xf32> to vector<8xf32>
    %130 = vector.shape_cast %129 : vector<8xf32> to vector<8x1xf32>
    %c1_i32_23 = arith.constant 1 : i32
    %131 = vector.broadcast %c1_i32_23 : i32 to vector<8x8xi32>
    %132 = arith.cmpi eq, %4, %131 : vector<8x8xi32>
    %cst_24 = arith.constant 0.000000e+00 : f32
    %133 = vector.shape_cast %130 : vector<8x1xf32> to vector<8x1xf32>
    %134 = vector.broadcast %133 : vector<8x1xf32> to vector<8x8xf32>
    %135 = vector.broadcast %cst_24 : f32 to vector<8x8xf32>
    %136 = arith.select %132, %134, %135 : vector<8x8xi1>, vector<8x8xf32>
    %137 = arith.addf %124, %136 : vector<8x8xf32>
    %138 = vector.extract_strided_slice %111 {offsets = [2, 0], sizes = [1, 512], strides = [1, 1]} : vector<8x512xf32> to vector<1x512xf32>
    %139 = vector.broadcast %138 : vector<1x512xf32> to vector<8x512xf32>
    %140 = arith.subf %111, %139 : vector<8x512xf32>
    %141 = math.absf %140 : vector<8x512xf32>
    %cst_25 = arith.constant dense<0.000000e+00> : vector<8xf32>
    %142 = vector.multi_reduction <add>, %141, %cst_25 [1] : vector<8x512xf32> to vector<8xf32>
    %143 = vector.shape_cast %142 : vector<8xf32> to vector<8x1xf32>
    %c2_i32_26 = arith.constant 2 : i32
    %144 = vector.broadcast %c2_i32_26 : i32 to vector<8x8xi32>
    %145 = arith.cmpi eq, %4, %144 : vector<8x8xi32>
    %cst_27 = arith.constant 0.000000e+00 : f32
    %146 = vector.shape_cast %143 : vector<8x1xf32> to vector<8x1xf32>
    %147 = vector.broadcast %146 : vector<8x1xf32> to vector<8x8xf32>
    %148 = vector.broadcast %cst_27 : f32 to vector<8x8xf32>
    %149 = arith.select %145, %147, %148 : vector<8x8xi1>, vector<8x8xf32>
    %150 = arith.addf %137, %149 : vector<8x8xf32>
    %151 = vector.extract_strided_slice %111 {offsets = [3, 0], sizes = [1, 512], strides = [1, 1]} : vector<8x512xf32> to vector<1x512xf32>
    %152 = vector.broadcast %151 : vector<1x512xf32> to vector<8x512xf32>
    %153 = arith.subf %111, %152 : vector<8x512xf32>
    %154 = math.absf %153 : vector<8x512xf32>
    %cst_28 = arith.constant dense<0.000000e+00> : vector<8xf32>
    %155 = vector.multi_reduction <add>, %154, %cst_28 [1] : vector<8x512xf32> to vector<8xf32>
    %156 = vector.shape_cast %155 : vector<8xf32> to vector<8x1xf32>
    %c3_i32_29 = arith.constant 3 : i32
    %157 = vector.broadcast %c3_i32_29 : i32 to vector<8x8xi32>
    %158 = arith.cmpi eq, %4, %157 : vector<8x8xi32>
    %cst_30 = arith.constant 0.000000e+00 : f32
    %159 = vector.shape_cast %156 : vector<8x1xf32> to vector<8x1xf32>
    %160 = vector.broadcast %159 : vector<8x1xf32> to vector<8x8xf32>
    %161 = vector.broadcast %cst_30 : f32 to vector<8x8xf32>
    %162 = arith.select %158, %160, %161 : vector<8x8xi1>, vector<8x8xf32>
    %163 = arith.addf %150, %162 : vector<8x8xf32>
    %164 = vector.extract_strided_slice %111 {offsets = [4, 0], sizes = [1, 512], strides = [1, 1]} : vector<8x512xf32> to vector<1x512xf32>
    %165 = vector.broadcast %164 : vector<1x512xf32> to vector<8x512xf32>
    %166 = arith.subf %111, %165 : vector<8x512xf32>
    %167 = math.absf %166 : vector<8x512xf32>
    %cst_31 = arith.constant dense<0.000000e+00> : vector<8xf32>
    %168 = vector.multi_reduction <add>, %167, %cst_31 [1] : vector<8x512xf32> to vector<8xf32>
    %169 = vector.shape_cast %168 : vector<8xf32> to vector<8x1xf32>
    %c4_i32_32 = arith.constant 4 : i32
    %170 = vector.broadcast %c4_i32_32 : i32 to vector<8x8xi32>
    %171 = arith.cmpi eq, %4, %170 : vector<8x8xi32>
    %cst_33 = arith.constant 0.000000e+00 : f32
    %172 = vector.shape_cast %169 : vector<8x1xf32> to vector<8x1xf32>
    %173 = vector.broadcast %172 : vector<8x1xf32> to vector<8x8xf32>
    %174 = vector.broadcast %cst_33 : f32 to vector<8x8xf32>
    %175 = arith.select %171, %173, %174 : vector<8x8xi1>, vector<8x8xf32>
    %176 = arith.addf %163, %175 : vector<8x8xf32>
    %177 = vector.extract_strided_slice %111 {offsets = [5, 0], sizes = [1, 512], strides = [1, 1]} : vector<8x512xf32> to vector<1x512xf32>
    %178 = vector.broadcast %177 : vector<1x512xf32> to vector<8x512xf32>
    %179 = arith.subf %111, %178 : vector<8x512xf32>
    %180 = math.absf %179 : vector<8x512xf32>
    %cst_34 = arith.constant dense<0.000000e+00> : vector<8xf32>
    %181 = vector.multi_reduction <add>, %180, %cst_34 [1] : vector<8x512xf32> to vector<8xf32>
    %182 = vector.shape_cast %181 : vector<8xf32> to vector<8x1xf32>
    %c5_i32_35 = arith.constant 5 : i32
    %183 = vector.broadcast %c5_i32_35 : i32 to vector<8x8xi32>
    %184 = arith.cmpi eq, %4, %183 : vector<8x8xi32>
    %cst_36 = arith.constant 0.000000e+00 : f32
    %185 = vector.shape_cast %182 : vector<8x1xf32> to vector<8x1xf32>
    %186 = vector.broadcast %185 : vector<8x1xf32> to vector<8x8xf32>
    %187 = vector.broadcast %cst_36 : f32 to vector<8x8xf32>
    %188 = arith.select %184, %186, %187 : vector<8x8xi1>, vector<8x8xf32>
    %189 = arith.addf %176, %188 : vector<8x8xf32>
    %190 = vector.extract_strided_slice %111 {offsets = [6, 0], sizes = [1, 512], strides = [1, 1]} : vector<8x512xf32> to vector<1x512xf32>
    %191 = vector.broadcast %190 : vector<1x512xf32> to vector<8x512xf32>
    %192 = arith.subf %111, %191 : vector<8x512xf32>
    %193 = math.absf %192 : vector<8x512xf32>
    %cst_37 = arith.constant dense<0.000000e+00> : vector<8xf32>
    %194 = vector.multi_reduction <add>, %193, %cst_37 [1] : vector<8x512xf32> to vector<8xf32>
    %195 = vector.shape_cast %194 : vector<8xf32> to vector<8x1xf32>
    %c6_i32_38 = arith.constant 6 : i32
    %196 = vector.broadcast %c6_i32_38 : i32 to vector<8x8xi32>
    %197 = arith.cmpi eq, %4, %196 : vector<8x8xi32>
    %cst_39 = arith.constant 0.000000e+00 : f32
    %198 = vector.shape_cast %195 : vector<8x1xf32> to vector<8x1xf32>
    %199 = vector.broadcast %198 : vector<8x1xf32> to vector<8x8xf32>
    %200 = vector.broadcast %cst_39 : f32 to vector<8x8xf32>
    %201 = arith.select %197, %199, %200 : vector<8x8xi1>, vector<8x8xf32>
    %202 = arith.addf %189, %201 : vector<8x8xf32>
    %203 = vector.extract_strided_slice %111 {offsets = [7, 0], sizes = [1, 512], strides = [1, 1]} : vector<8x512xf32> to vector<1x512xf32>
    %204 = vector.broadcast %203 : vector<1x512xf32> to vector<8x512xf32>
    %205 = arith.subf %111, %204 : vector<8x512xf32>
    %206 = math.absf %205 : vector<8x512xf32>
    %cst_40 = arith.constant dense<0.000000e+00> : vector<8xf32>
    %207 = vector.multi_reduction <add>, %206, %cst_40 [1] : vector<8x512xf32> to vector<8xf32>
    %208 = vector.shape_cast %207 : vector<8xf32> to vector<8x1xf32>
    %c7_i32_41 = arith.constant 7 : i32
    %209 = vector.broadcast %c7_i32_41 : i32 to vector<8x8xi32>
    %210 = arith.cmpi eq, %4, %209 : vector<8x8xi32>
    %cst_42 = arith.constant 0.000000e+00 : f32
    %211 = vector.shape_cast %208 : vector<8x1xf32> to vector<8x1xf32>
    %212 = vector.broadcast %211 : vector<8x1xf32> to vector<8x8xf32>
    %213 = vector.broadcast %cst_42 : f32 to vector<8x8xf32>
    %214 = arith.select %210, %212, %213 : vector<8x8xi1>, vector<8x8xf32>
    %215 = arith.addf %202, %214 : vector<8x8xf32>
    %c0_43 = arith.constant 0 : index
    %c0_44 = arith.constant 0 : index
    %c0_45 = arith.constant 0 : index
    %216 = vector.load %arg3[%c0_43, %c0_44, %c0_45] : memref<1x8x8xf32, #tpu.memory_space<vmem>>, vector<1x8x8xf32>
    %217 = vector.shape_cast %215 : vector<8x8xf32> to vector<1x8x8xf32>
    %218 = arith.addf %216, %217 : vector<1x8x8xf32>
    %c0_46 = arith.constant 0 : index
    %c0_47 = arith.constant 0 : index
    %c0_48 = arith.constant 0 : index
    %219 = vector.load %arg3[%c0_46, %c0_47, %c0_48] : memref<1x8x8xf32, #tpu.memory_space<vmem>>, vector<1x8x8xf32>
    tpu.vector_store %arg3[%c0_46, %c0_47, %c0_48], %218 {strides = array<i32>} : memref<1x8x8xf32, #tpu.memory_space<vmem>>, vector<1x8x8xf32>,
    return
  }
  func.func @transform_0(%arg0: i32, %arg1: i32) -> (i32, i32) {
    %c1_i32 = arith.constant 1 : i32
    %0 = arith.muli %arg0, %c1_i32 : i32
    %1 = arith.addi %0, %arg1 : i32
    %c0_i32 = arith.constant 0 : i32
    %c0_i32_0 = arith.constant 0 : i32
    return %c0_i32, %1 : i32, i32
  }
  func.func @transform_1(%arg0: i32, %arg1: i32) -> (i32, i32, i32) {
    %c0_i32 = arith.constant 0 : i32
    %c0_i32_0 = arith.constant 0 : i32
    %c0_i32_1 = arith.constant 0 : i32
    return %arg0, %c0_i32, %c0_i32_0 : i32, i32, i32
  }
}

</mosaic_0001>

<bundles_post_ra>
// kernel: tpu_custom_call.1
= control target key start
LH: loop header
LB: loop body
LE: loop exit
PB: predicated region body
PF: predicated region fallthrough
CT: control target
= control target key end

     0   :  { %6 = vsyncpa [#allocation3], 0  ;;  %s898_s0 = inlined_call_operand.hbm [shape: f32[8,1024], index: 0, kind: input, shape index: {}]   ;;  %s899_s1 = inlined_call_operand.hbm [shape: f32[1,8,8], index: 1, kind: output, shape index: {}]  }
   0x1   :  { %7 = vsyncpa [#allocation4], 0  ;;  %s617_s6 = smov [#allocation2]   ;;  %s569_s10 = scalar_lea.hbm %s898_s0, 1024 }
   0x2   :  { %s18_s7 = sshll.u32 %s617_s6, 4  ;;  %p570_p0 = scmp.ne.s32.totalorder %s898_s0, %s569_s10  ;;  %s19_s7 = int_to_ptr.vmem [resolvable:$true] %s18_s7 }
   0x3   :  { %p573_p1 = scmp.lt.u32.totalorder %s569_s10, %s898_s0 }
   0x5   :  { %p575_p2 = pnand %p573_p1, %p570_p0 }
   0x7   :  { %578 = shalt.err (!%p575_p2)
}
   0x8   :  { %s579_s15 = scalar_lea.vmem %s19_s7, 1024  ;;  %p584_p4 = scmp.lt.s32.totalorder %s19_s7, %s19_s7 }
   0x9   :  { %p580_p3 = scmp.ne.s32.totalorder %s19_s7, %s579_s15  ;;  %p585_p5 = scmp.lt.s32.totalorder %s579_s15, %s579_s15 }
   0xb   :  { %p586_p6 = por %p585_p5, %p584_p4 }
   0xd   :  { %p587_p7 = pnand %p586_p6, %p580_p3 }
   0xf   :  { %590 = shalt.err (!%p587_p7)
}
  0x10   :  { %21 = dma.hbm_to_vmem [thread:$0]  %s898_s0, 1024, %s19_s7, [#allocation3]  }
  0x11   :  { %613 = dma.done.wait [#allocation3], 1024  }
  0x12   :  { %614 = vsyncadd [#allocation3], 4294966272  ;;  %vm31_vm0 = vcmask 64512   ;;  %v41_v0 = vlaneseq  ;;  %v618_v1 = vmov 0.0   ;;  %v654_v8 = vld [vmem:[#allocation2] sm:$0xff]  ;;  %v656_v9 = vld [vmem:[#allocation2 + $0x8] sm:$0xff] }
  0x13   :  { %32 = vst.msk [vmem:[#allocation5] sm:$0xff] %vm31_vm0, %v618_v1  ;;  %v658_v10 = vld [vmem:[#allocation2 + $0x10] sm:$0xff]  ;;  %v666_v14 = vld [vmem:[#allocation2 + $0x18] sm:$0xff]  ;;  %s619_s0 = smov [#allocation5]  }
  0x14   :  { %v44_v2 = vshrl.u32 %v41_v0, 7  ;;  %s557_s18 = sshll.u32 %s619_s0, 4  ;;  %s558_s18 = int_to_ptr.vmem [resolvable:$true] %s557_s18 }
  0x15   :  { %s591_s19 = scalar_lea.vmem %s558_s18, 128  ;;  %p596_p9 = scmp.lt.s32.totalorder %s558_s18, %s558_s18 }
  0x16   :  { %v644_v3 = vsub.s32 0, %v44_v2  ;;  %v646_v4 = vsub.s32 2, %v44_v2  ;;  %v648_v5 = vsub.s32 1, %v44_v2  ;;  %v650_v6 = vsub.s32 3, %v44_v2  ;;  %p592_p8 = scmp.ne.s32.totalorder %s558_s18, %s591_s19  ;;  %p597_p10 = scmp.lt.s32.totalorder %s591_s19, %s591_s19 }
  0x17   :  { %v652_v7 = vsub.s32 4, %v44_v2  ;;  %v660_v11 = vsub.s32 5, %v44_v2  ;;  %v662_v12 = vsub.s32 6, %v44_v2  ;;  %v664_v13 = vsub.s32 7, %v44_v2 }
  0x18   :  { %v46_v15 = vrot.slane %v654_v8, %v644_v3  ;;  %v50_v16 = vrot.slane %v656_v9, %v644_v3  ;;  %v54_v17 = vrot.slane %v658_v10, %v644_v3  ;;  %v110_v18 = vrot.slane %v654_v8, %v646_v4  ;;  %p598_p11 = por %p597_p10, %p596_p9 }
  0x19   :  { %v58_v19 = vrot.slane %v666_v14, %v644_v3  ;;  %v114_v20 = vrot.slane %v656_v9, %v646_v4  ;;  %v118_v21 = vrot.slane %v658_v10, %v646_v4  ;;  %v122_v22 = vrot.slane %v666_v14, %v646_v4 }
  0x1a   :  { %v59_v23 = vsub.f32 %v654_v8, %v46_v15  ;;  %v60_v24 = vsub.f32 %v656_v9, %v50_v16  ;;  %v61_v25 = vsub.f32 %v658_v10, %v54_v17  ;;  %v123_v26 = vsub.f32 %v654_v8, %v110_v18  ;;  %p599_p12 = pnand %p598_p11, %p592_p8 }
  0x1b   :  { %v62_v27 = vsub.f32 %v666_v14, %v58_v19  ;;  %v124_v28 = vsub.f32 %v656_v9, %v114_v20  ;;  %v125_v29 = vsub.f32 %v658_v10, %v118_v21  ;;  %v126_v30 = vsub.f32 %v666_v14, %v122_v22 }
  0x1c   :  { %v63_v31 = vand.u32 2147483647, %v59_v23  ;;  %v64_v32 = vand.u32 2147483647, %v60_v24  ;;  %v65_v33 = vand.u32 2147483647, %v61_v25  ;;  %v78_v34 = vrot.slane %v654_v8, %v648_v5 }
  0x1d   :  { %v66_v35 = vand.u32 2147483647, %v62_v27  ;;  %v127_v36 = vand.u32 2147483647, %v123_v26  ;;  %v128_v37 = vand.u32 2147483647, %v124_v28  ;;  %v82_v38 = vrot.slane %v656_v9, %v648_v5 }
  0x1e   :  { %v67_v39 = vadd.f32 %v64_v32, %v63_v31  ;;  %v129_v40 = vand.u32 2147483647, %v125_v29  ;;  %v130_v41 = vand.u32 2147483647, %v126_v30  ;;  %v86_v42 = vrot.slane %v658_v10, %v648_v5 }
  0x1f   :  { %v131_v43 = vadd.f32 %v128_v37, %v127_v36  ;;  %v90_v44 = vrot.slane %v666_v14, %v648_v5  ;;  %v91_v45 = vsub.f32 %v654_v8, %v78_v34  ;;  %v92_v46 = vsub.f32 %v656_v9, %v82_v38 }
  0x20   :  { %v68_v47 = vadd.f32 %v67_v39, %v65_v33  ;;  %v93_v48 = vsub.f32 %v658_v10, %v86_v42  ;;  %v142_v49 = vrot.slane %v654_v8, %v650_v6  ;;  %v146_v50 = vrot.slane %v656_v9, %v650_v6 }
  0x21   :  { %v132_v51 = vadd.f32 %v131_v43, %v129_v40  ;;  %v94_v52 = vsub.f32 %v666_v14, %v90_v44  ;;  %v95_v53 = vand.u32 2147483647, %v91_v45  ;;  %v96_v54 = vand.u32 2147483647, %v92_v46 }
  0x22   :  { %v69_v55 = vadd.f32 %v68_v47, %v66_v35  ;;  %v97_v56 = vand.u32 2147483647, %v93_v48  ;;  %v150_v57 = vrot.slane %v658_v10, %v650_v6  ;;  %v154_v58 = vrot.slane %v666_v14, %v650_v6 }
  0x23   :  { %v133_v59 = vadd.f32 %v132_v51, %v130_v41  ;;  %v98_v60 = vand.u32 2147483647, %v94_v52  ;;  %v99_v61 = vadd.f32 %v96_v54, %v95_v53  ;;  %v155_v62 = vsub.f32 %v654_v8, %v142_v49 }
  0x24   :  { %70 = vadd.xlane.f32.xlu0 %v69_v55  ;;  %v156_v63 = vsub.f32 %v656_v9, %v146_v50  ;;  %v157_v1 = vsub.f32 %v658_v10, %v150_v57  ;;  %v158_v2 = vsub.f32 %v666_v14, %v154_v58  ;;  %v174_v15 = vrot.slane %v654_v8, %v652_v7 }
  0x25   :  { %134 = vadd.xlane.f32.xlu1 %v133_v59  ;;  %v100_v16 = vadd.f32 %v99_v61, %v97_v56  ;;  %v159_v17 = vand.u32 2147483647, %v155_v62  ;;  %v178_v18 = vrot.slane %v656_v9, %v652_v7  ;;  %v182_v19 = vrot.slane %v658_v10, %v652_v7 }
  0x26   :  { %v160_v20 = vand.u32 2147483647, %v156_v63  ;;  %v161_v21 = vand.u32 2147483647, %v157_v1  ;;  %v162_v22 = vand.u32 2147483647, %v158_v2  ;;  %v186_v23 = vrot.slane %v666_v14, %v652_v7 }
  0x27   :  { %v101_v24 = vadd.f32 %v100_v16, %v98_v60  ;;  %v187_v25 = vsub.f32 %v654_v8, %v174_v15  ;;  %v188_v26 = vsub.f32 %v656_v9, %v178_v18  ;;  %v189_v27 = vsub.f32 %v658_v10, %v182_v19  ;;  %v756_v1 = vld [vmem:[#allocation2 + $0x20] sm:$0xff]  ;;  %v762_v18 = vld [vmem:[#allocation2 + $0x28] sm:$0xff] }
  0x28   :  { %v163_v28 = vadd.f32 %v160_v20, %v159_v17  ;;  %v190_v29 = vsub.f32 %v666_v14, %v186_v23  ;;  %v206_v30 = vrot.slane %v654_v8, %v660_v11  ;;  %v210_v31 = vrot.slane %v656_v9, %v660_v11  ;;  %v766_v23 = vld [vmem:[#allocation2 + $0x30] sm:$0xff] }
  0x29   :  { %102 = vadd.xlane.f32.xlu0 %v101_v24  ;;  %v191_v32 = vand.u32 2147483647, %v187_v25  ;;  %v192_v33 = vand.u32 2147483647, %v188_v26  ;;  %v193_v34 = vand.u32 2147483647, %v189_v27  ;;  %v214_v35 = vrot.slane %v658_v10, %v660_v11 }
  0x2a   :  { %v164_v36 = vadd.f32 %v163_v28, %v161_v21  ;;  %v194_v37 = vand.u32 2147483647, %v190_v29  ;;  %v218_v38 = vrot.slane %v666_v14, %v660_v11  ;;  %v219_v39 = vsub.f32 %v654_v8, %v206_v30  ;;  %v768_v24 = vld [vmem:[#allocation2 + $0x38] sm:$0xff] }
  0x2b   :  { %v195_v40 = vadd.f32 %v192_v33, %v191_v32  ;;  %v220_v41 = vsub.f32 %v656_v9, %v210_v31  ;;  %v221_v42 = vsub.f32 %v658_v10, %v214_v35  ;;  %v238_v43 = vrot.slane %v654_v8, %v662_v12 }
  0x2c   :  { %v165_v44 = vadd.f32 %v164_v36, %v162_v22  ;;  %v222_v45 = vsub.f32 %v666_v14, %v218_v38  ;;  %v223_v46 = vand.u32 2147483647, %v219_v39  ;;  %v242_v47 = vrot.slane %v656_v9, %v662_v12 }
  0x2d   :  { %v196_v48 = vadd.f32 %v195_v40, %v193_v34  ;;  %v224_v49 = vand.u32 2147483647, %v220_v41  ;;  %v225_v50 = vand.u32 2147483647, %v221_v42  ;;  %v246_v51 = vrot.slane %v658_v10, %v662_v12 }
  0x2e   :  { %166 = vadd.xlane.f32.xlu1 %v165_v44  ;;  %v226_v52 = vand.u32 2147483647, %v222_v45  ;;  %v250_v53 = vrot.slane %v666_v14, %v662_v12  ;;  %v251_v54 = vsub.f32 %v654_v8, %v238_v43  ;;  %v252_v55 = vsub.f32 %v656_v9, %v242_v47 }
  0x2f   :  { %v197_v56 = vadd.f32 %v196_v48, %v194_v37  ;;  %v227_v57 = vadd.f32 %v224_v49, %v223_v46  ;;  %v253_v58 = vsub.f32 %v658_v10, %v246_v51  ;;  %v270_v59 = vrot.slane %v654_v8, %v664_v13 }
  0x30   :  { %v254_v60 = vsub.f32 %v666_v14, %v250_v53  ;;  %v255_v61 = vand.u32 2147483647, %v251_v54  ;;  %v256_v62 = vand.u32 2147483647, %v252_v55  ;;  %v274_v63 = vrot.slane %v656_v9, %v664_v13 }
  0x31   :  { %198 = vadd.xlane.f32.xlu0 %v197_v56  ;;  %v228_v2 = vadd.f32 %v227_v57, %v225_v50  ;;  %v257_v15 = vand.u32 2147483647, %v253_v58  ;;  %v278_v16 = vrot.slane %v658_v10, %v664_v13  ;;  %v282_v17 = vrot.slane %v666_v14, %v664_v13 }
  0x32   :  { %v258_v19 = vand.u32 2147483647, %v254_v60  ;;  %v259_v20 = vadd.f32 %v256_v62, %v255_v61  ;;  %v283_v21 = vsub.f32 %v654_v8, %v270_v59  ;;  %v284_v22 = vsub.f32 %v656_v9, %v274_v63 }
  0x33   :  { %v229_v25 = vadd.f32 %v228_v2, %v226_v52  ;;  %v285_v26 = vsub.f32 %v658_v10, %v278_v16  ;;  %v286_v27 = vsub.f32 %v666_v14, %v282_v17  ;;  %v302_v28 = vrot.slane %v756_v1, %v644_v3 }
  0x34   :  { %v260_v29 = vadd.f32 %v259_v20, %v257_v15  ;;  %v287_v30 = vand.u32 2147483647, %v283_v21  ;;  %v288_v31 = vand.u32 2147483647, %v284_v22  ;;  %v306_v8 = vrot.slane %v762_v18, %v644_v3 }
  0x35   :  { %230 = vadd.xlane.f32.xlu1 %v229_v25  ;;  %v289_v9 = vand.u32 2147483647, %v285_v26  ;;  %v290_v32 = vand.u32 2147483647, %v286_v27  ;;  %v310_v33 = vrot.slane %v766_v23, %v644_v3  ;;  %v314_v10 = vrot.slane %v768_v24, %v644_v3 }
  0x36   :  { %v261_v34 = vadd.f32 %v260_v29, %v258_v19  ;;  %v291_v14 = vadd.f32 %v288_v31, %v287_v30  ;;  %v315_v35 = vsub.f32 %v756_v1, %v302_v28  ;;  %v316_v36 = vsub.f32 %v762_v18, %v306_v8 }
  0x37   :  { %v317_v37 = vsub.f32 %v766_v23, %v310_v33  ;;  %v318_v38 = vsub.f32 %v768_v24, %v314_v10  ;;  %v333_v39 = vrot.slane %v756_v1, %v648_v5  ;;  %v337_v40 = vrot.slane %v762_v18, %v648_v5 }
  0x38   :  { %262 = vadd.xlane.f32.xlu0 %v261_v34  ;;  %v292_v41 = vadd.f32 %v291_v14, %v289_v9  ;;  %v319_v42 = vand.u32 2147483647, %v315_v35  ;;  %v320_v3 = vand.u32 2147483647, %v316_v36  ;;  %v341_v43 = vrot.slane %v766_v23, %v648_v5 }
  0x39   :  { %v321_v44 = vand.u32 2147483647, %v317_v37  ;;  %v322_v45 = vand.u32 2147483647, %v318_v38  ;;  %v345_v46 = vrot.slane %v768_v24, %v648_v5  ;;  %v346_v47 = vsub.f32 %v756_v1, %v333_v39 }
  0x3a   :  { %v293_v48 = vadd.f32 %v292_v41, %v290_v32  ;;  %v323_v49 = vadd.f32 %v320_v3, %v319_v42  ;;  %v347_v50 = vsub.f32 %v762_v18, %v337_v40  ;;  %v348_v51 = vsub.f32 %v766_v23, %v341_v43 }
  0x3b   :  { %v349_v52 = vsub.f32 %v768_v24, %v345_v46  ;;  %v350_v53 = vand.u32 2147483647, %v346_v47  ;;  %v364_v54 = vrot.slane %v756_v1, %v646_v4  ;;  %v368_v55 = vrot.slane %v762_v18, %v646_v4 }
  0x3c   :  { %294 = vadd.xlane.f32.xlu1 %v293_v48  ;;  %v324_v56 = vadd.f32 %v323_v49, %v321_v44  ;;  %v351_v5 = vand.u32 2147483647, %v347_v50  ;;  %v352_v57 = vand.u32 2147483647, %v348_v51  ;;  %v372_v58 = vrot.slane %v766_v23, %v646_v4 }
  0x3d   :  { %v353_v59 = vand.u32 2147483647, %v349_v52  ;;  %v376_v60 = vrot.slane %v768_v24, %v646_v4  ;;  %v377_v61 = vsub.f32 %v756_v1, %v364_v54  ;;  %v378_v62 = vsub.f32 %v762_v18, %v368_v55 }
  0x3e   :  { %v325_v63 = vadd.f32 %v324_v56, %v322_v45  ;;  %v354_v2 = vadd.f32 %v351_v5, %v350_v53  ;;  %v379_v15 = vsub.f32 %v766_v23, %v372_v58  ;;  %v395_v16 = vrot.slane %v756_v1, %v650_v6 }
  0x3f   :  { %v380_v17 = vsub.f32 %v768_v24, %v376_v60  ;;  %v381_v19 = vand.u32 2147483647, %v377_v61  ;;  %v382_v20 = vand.u32 2147483647, %v378_v62  ;;  %v399_v21 = vrot.slane %v762_v18, %v650_v6 }
  0x40   :  { %326 = vadd.xlane.f32.xlu0 %v325_v63  ;;  %v355_v4 = vadd.f32 %v354_v2, %v352_v57  ;;  %v383_v22 = vand.u32 2147483647, %v379_v15  ;;  %v403_v25 = vrot.slane %v766_v23, %v650_v6  ;;  %v407_v26 = vrot.slane %v768_v24, %v650_v6 }
  0x41   :  { %v384_v27 = vand.u32 2147483647, %v380_v17  ;;  %v385_v28 = vadd.f32 %v382_v20, %v381_v19  ;;  %v408_v29 = vsub.f32 %v756_v1, %v395_v16  ;;  %v409_v30 = vsub.f32 %v762_v18, %v399_v21 }
  0x42   :  { %v356_v31 = vadd.f32 %v355_v4, %v353_v59  ;;  %v410_v8 = vsub.f32 %v766_v23, %v403_v25  ;;  %v411_v9 = vsub.f32 %v768_v24, %v407_v26  ;;  %v426_v32 = vrot.slane %v756_v1, %v652_v7 }
  0x43   :  { %v386_v33 = vadd.f32 %v385_v28, %v383_v22  ;;  %v412_v10 = vand.u32 2147483647, %v408_v29  ;;  %v413_v34 = vand.u32 2147483647, %v409_v30  ;;  %v430_v6 = vrot.slane %v762_v18, %v652_v7 }
  0x44   :  { %357 = vadd.xlane.f32.xlu1 %v356_v31  ;;  %v414_v14 = vand.u32 2147483647, %v410_v8  ;;  %v415_v35 = vand.u32 2147483647, %v411_v9  ;;  %v434_v36 = vrot.slane %v766_v23, %v652_v7  ;;  %v438_v37 = vrot.slane %v768_v24, %v652_v7 }
  0x45   :  { %v387_v38 = vadd.f32 %v386_v33, %v384_v27  ;;  %v416_v39 = vadd.f32 %v413_v34, %v412_v10  ;;  %v439_v40 = vsub.f32 %v756_v1, %v426_v32  ;;  %v440_v41 = vsub.f32 %v762_v18, %v430_v6 }
  0x46   :  { %v441_v42 = vsub.f32 %v766_v23, %v434_v36  ;;  %v442_v3 = vsub.f32 %v768_v24, %v438_v37  ;;  %v457_v43 = vrot.slane %v756_v1, %v660_v11  ;;  %v461_v44 = vrot.slane %v762_v18, %v660_v11 }
  0x47   :  { %388 = vadd.xlane.f32.xlu0 %v387_v38  ;;  %v417_v45 = vadd.f32 %v416_v39, %v414_v14  ;;  %v443_v46 = vand.u32 2147483647, %v439_v40  ;;  %v444_v7 = vand.u32 2147483647, %v440_v41  ;;  %v465_v47 = vrot.slane %v766_v23, %v660_v11 }
  0x48   :  { %v445_v48 = vand.u32 2147483647, %v441_v42  ;;  %v446_v49 = vand.u32 2147483647, %v442_v3  ;;  %v469_v50 = vrot.slane %v768_v24, %v660_v11  ;;  %v470_v51 = vsub.f32 %v756_v1, %v457_v43 }
  0x49   :  { %v418_v52 = vadd.f32 %v417_v45, %v415_v35  ;;  %v447_v53 = vadd.f32 %v444_v7, %v443_v46  ;;  %v471_v54 = vsub.f32 %v762_v18, %v461_v44  ;;  %v472_v55 = vsub.f32 %v766_v23, %v465_v47 }
  0x4a   :  { %v473_v56 = vsub.f32 %v768_v24, %v469_v50  ;;  %v474_v5 = vand.u32 2147483647, %v470_v51  ;;  %v488_v57 = vrot.slane %v756_v1, %v662_v12  ;;  %v492_v58 = vrot.slane %v762_v18, %v662_v12 }
  0x4b   :  { %419 = vadd.xlane.f32.xlu1 %v418_v52  ;;  %v448_v59 = vadd.f32 %v447_v53, %v445_v48  ;;  %v475_v11 = vand.u32 2147483647, %v471_v54  ;;  %v476_v60 = vand.u32 2147483647, %v472_v55  ;;  %v496_v61 = vrot.slane %v766_v23, %v662_v12 }
  0x4c   :  { %v477_v62 = vand.u32 2147483647, %v473_v56  ;;  %v500_v63 = vrot.slane %v768_v24, %v662_v12  ;;  %v501_v2 = vsub.f32 %v756_v1, %v488_v57  ;;  %v502_v15 = vsub.f32 %v762_v18, %v492_v58 }
  0x4d   :  { %v449_v16 = vadd.f32 %v448_v59, %v446_v49  ;;  %v478_v17 = vadd.f32 %v475_v11, %v474_v5  ;;  %v503_v19 = vsub.f32 %v766_v23, %v496_v61  ;;  %v519_v20 = vrot.slane %v756_v1, %v664_v13 }
  0x4e   :  { %v504_v21 = vsub.f32 %v768_v24, %v500_v63  ;;  %v505_v4 = vand.u32 2147483647, %v501_v2  ;;  %v506_v22 = vand.u32 2147483647, %v502_v15  ;;  %v523_v25 = vrot.slane %v762_v18, %v664_v13 }
  0x4f   :  { %450 = vadd.xlane.f32.xlu0 %v449_v16  ;;  %v479_v12 = vadd.f32 %v478_v17, %v476_v60  ;;  %v507_v26 = vand.u32 2147483647, %v503_v19  ;;  %v527_v27 = vrot.slane %v766_v23, %v664_v13  ;;  %v531_v28 = vrot.slane %v768_v24, %v664_v13 }
  0x50   :  { %v508_v29 = vand.u32 2147483647, %v504_v21  ;;  %v509_v30 = vadd.f32 %v506_v22, %v505_v4  ;;  %v532_v31 = vsub.f32 %v756_v1, %v519_v20  ;;  %v533_v8 = vsub.f32 %v762_v18, %v523_v25 }
  0x51   :  { %v480_v9 = vadd.f32 %v479_v12, %v477_v62  ;;  %v534_v32 = vsub.f32 %v766_v23, %v527_v27  ;;  %v535_v33 = vsub.f32 %v768_v24, %v531_v28  ;;  %v42_v1 = vand.u32 127, %v41_v0  ;;  %v547_v28 = vld [vmem:[#allocation5] sm:$0xff] }
  0x52   :  { %v510_v10 = vadd.f32 %v509_v30, %v507_v26  ;;  %v536_v34 = vand.u32 2147483647, %v532_v31  ;;  %v537_v6 = vand.u32 2147483647, %v533_v8 }
  0x53   :  { %481 = vadd.xlane.f32.xlu1 %v480_v9  ;;  %v538_v14 = vand.u32 2147483647, %v534_v32  ;;  %v539_v36 = vand.u32 2147483647, %v535_v33  ;;  %vm72_vm1 = vcmp.eq.s32.totalorder %v42_v1, 0  ;;  %vm104_vm2 = vcmp.eq.s32.totalorder %v42_v1, 1 }
  0x54   :  { %v511_v35 = vadd.f32 %v510_v10, %v508_v29  ;;  %v540_v37 = vadd.f32 %v537_v6, %v536_v34  ;;  %vm136_vm3 = vcmp.eq.s32.totalorder %v42_v1, 2  ;;  %vm168_vm4 = vcmp.eq.s32.totalorder %v42_v1, 3 }
  0x55   :  { %vm200_vm5 = vcmp.eq.s32.totalorder %v42_v1, 4  ;;  %vm232_vm6 = vcmp.eq.s32.totalorder %v42_v1, 5  ;;  %vm264_vm7 = vcmp.eq.s32.totalorder %v42_v1, 6  ;;  %vm296_vm8 = vcmp.eq.s32.totalorder %v42_v1, 7 }
  0x56   :  { %512 = vadd.xlane.f32.xlu0 %v511_v35  ;;  %v541_v13 = vadd.f32 %v540_v37, %v538_v14 }
  0x58   :  { %v542_v38 = vadd.f32 %v541_v13, %v539_v36 }
  0x5a   :  { %543 = vadd.xlane.f32.xlu1 %v542_v38 }
  0xb1   :  { %v71_v18 = vpop.xlane.xlu0 %70 }
  0xb2   :  { %v135_v23 = vpop.xlane.xlu1 %134  ;;  %v73_v39 = vsel %vm72_vm1, %v71_v18, 0.0 }
  0xb3   :  { %v137_v42 = vsel %vm136_vm3, %v135_v23, 0.0 }
  0xb6   :  { %v103_v24 = vpop.xlane.xlu0 %102 }
  0xb7   :  { %v105_v40 = vsel %vm104_vm2, %v103_v24, 0.0 }
  0xb8   :  { %v106_v41 = vadd.f32 %v105_v40, %v73_v39 }
  0xba   :  { %v138_v3 = vadd.f32 %v137_v42, %v106_v41 }
  0xbb   :  { %v167_v43 = vpop.xlane.xlu1 %166 }
  0xbc   :  { %v169_v44 = vsel %vm168_vm4, %v167_v43, 0.0 }
  0xbd   :  { %v170_v0 = vadd.f32 %v169_v44, %v138_v3 }
  0xbe   :  { %v199_v45 = vpop.xlane.xlu0 %198 }
  0xbf   :  { %v201_v46 = vsel %vm200_vm5, %v199_v45, 0.0 }
  0xc0   :  { %v202_v7 = vadd.f32 %v201_v46, %v170_v0 }
  0xc2   :  { %v231_v47 = vpop.xlane.xlu1 %230 }
  0xc3   :  { %v233_v48 = vsel %vm232_vm6, %v231_v47, 0.0 }
  0xc4   :  { %v234_v49 = vadd.f32 %v233_v48, %v202_v7 }
  0xc5   :  { %v263_v50 = vpop.xlane.xlu0 %262 }
  0xc6   :  { %v265_v51 = vsel %vm264_vm7, %v263_v50, 0.0 }
  0xc7   :  { %v266_v52 = vadd.f32 %v265_v51, %v234_v49 }
  0xc9   :  { %v295_v53 = vpop.xlane.xlu1 %294 }
  0xca   :  { %v297_v54 = vsel %vm296_vm8, %v295_v53, 0.0 }
  0xcb   :  { %v298_v55 = vadd.f32 %v297_v54, %v266_v52 }
  0xcd   :  { %v327_v56 = vpop.xlane.xlu0 %326 }
  0xce   :  { %v328_v5 = vsel %vm72_vm1, %v327_v56, 0.0 }
  0xcf   :  { %v329_v57 = vadd.f32 %v328_v5, %v298_v55 }
  0xd1   :  { %v358_v58 = vpop.xlane.xlu1 %357 }
  0xd2   :  { %v359_v59 = vsel %vm104_vm2, %v358_v58, 0.0 }
  0xd3   :  { %v360_v11 = vadd.f32 %v359_v59, %v329_v57 }
  0xd4   :  { %v389_v60 = vpop.xlane.xlu0 %388 }
  0xd5   :  { %v390_v61 = vsel %vm136_vm3, %v389_v60, 0.0 }
  0xd6   :  { %v391_v62 = vadd.f32 %v390_v61, %v360_v11 }
  0xd8   :  { %v420_v63 = vpop.xlane.xlu1 %419 }
  0xd9   :  { %v421_v2 = vsel %vm168_vm4, %v420_v63, 0.0 }
  0xda   :  { %v422_v15 = vadd.f32 %v421_v2, %v391_v62 }
  0xdc   :  { %v451_v16 = vpop.xlane.xlu0 %450 }
  0xdd   :  { %v452_v17 = vsel %vm200_vm5, %v451_v16, 0.0 }
  0xde   :  { %v453_v19 = vadd.f32 %v452_v17, %v422_v15 }
  0xe0   :  { %v482_v20 = vpop.xlane.xlu1 %481 }
  0xe1   :  { %v483_v21 = vsel %vm232_vm6, %v482_v20, 0.0 }
  0xe2   :  { %v484_v4 = vadd.f32 %v483_v21, %v453_v19 }
  0xe3   :  { %v513_v22 = vpop.xlane.xlu0 %512 }
  0xe4   :  { %v514_v25 = vsel %vm264_vm7, %v513_v22, 0.0 }
  0xe5   :  { %v515_v12 = vadd.f32 %v514_v25, %v484_v4 }
  0xe7   :  { %v544_v26 = vpop.xlane.xlu1 %543 }
  0xe8   :  { %v545_v27 = vsel %vm296_vm8, %v544_v26, 0.0 }
  0xe9   :  { %v546_v29 = vadd.f32 %v545_v27, %v515_v12 }
  0xeb   :  { %v548_v30 = vadd.f32 %v547_v28, %v546_v29 }
  0xed   :  { %550 = vst.msk [vmem:[#allocation5] sm:$0xff] %vm31_vm0, %v548_v30 }
  0xee   :  { %602 = shalt.err (!%p599_p12)
}
  0xef   :  { %s603_s22 = scalar_lea.hbm %s899_s1, 128 }
  0xf0   :  { %p604_p13 = scmp.ne.s32.totalorder %s899_s1, %s603_s22  ;;  %p607_p0 = scmp.lt.u32.totalorder %s603_s22, %s899_s1 }
  0xf2   :  { %p609_p1 = pnand %p607_p0, %p604_p13 }
  0xf4   :  { %612 = shalt.err (!%p609_p1)
}
  0xf5   :  { %560 = dma.vmem_to_hbm [thread:$0]  %s558_s18, 128, %s899_s1, [#allocation4]  }
  0xf6   :  { %615 = dma.done.wait [#allocation4], 128  }
  0xf7   :  { %616 = vsyncadd [#allocation4], 4294967168 }
  0xf8   :  { %564 = vsyncpa [#allocation3], 1 }
  0xf9   :  { %565 = vsyncpa [#allocation4], 1 }

</bundles_post_ra>
